<compile_context>
chip_gen: v6e
topology: v6e:2x2x1
jax: 0.10.0
libtpu: 0.0.40
codegen_flags: <defaults>
</compile_context>

<pallas_src>
import jax
import jax.numpy as jnp
from jax.experimental import pallas as pl
from jax.experimental.pallas import tpu as pltpu

KH = KW = 4
STRIDE = 2
PAD = 1
BN_EPS = 1e-5
LRELU_SLOPE = 0.01            # PyTorch nn.LeakyReLU() default


def _round_up(v, m):
    return (v + m - 1) // m * m


def _vmem_budget_bytes():
    """Generation-aware VMEM sizing (v5e/v6e: 128 MiB physical, v7x: 64 MiB per TC)."""
    cap = 64 * 1024 * 1024
    try:
        cap = int(getattr(pltpu.get_tpu_info(), "vmem_capacity_bytes", cap))
    except Exception:
        pass
    budget = min(int(cap * 0.55), 88 * 1024 * 1024)
    limit = min(int(cap * 0.80), 112 * 1024 * 1024)
    return budget, limit


def _pick_tile(ohw, k, cr, budget):
    """Spatial (lane) tile for both passes; the biggest that fits the VMEM budget."""
    def bytes_needed(tm):
        p1 = (2 * 2 * k * tm            # patches block, bf16, double buffered
              + 2 * 2 * cr * tm         # y block, bf16, double buffered
              + 2 * 2 * cr * k          # resident weights, bf16
              + 4 * cr * tm             # fp32 dot result
              + 2 * 2 * cr * 128 * 4)   # stats accumulators
        p2 = 2 * 2 * cr * tm + 2 * 4 * cr * tm + 2 * 8 * cr
        return max(p1, p2)

    ohw8 = _round_up(ohw, 8)
    if ohw8 <= 16384 and bytes_needed(ohw8) <= budget:
        return ohw8, ohw8                      # one tile per image (full extent -> no 128 rule)
    tm = 2048
    while tm > 128 and bytes_needed(tm) > budget:
        tm //= 2
    return tm, _round_up(ohw, tm)


def _conv_stats_kernel(p_ref, w_ref, y_ref, sum_ref, sq_ref):
    # p_ref: (1, K, TM) bf16   w_ref: (Cr, K) bf16 (resident)   y_ref: (1, Cr, TM) bf16
    # sum_ref / sq_ref: (1, Cr, 128) fp32 per-image accumulators (lane-replicated values)
    @pl.when(pl.program_id(1) == 0)
    def _init():
        sum_ref[...] = jnp.zeros_like(sum_ref)
        sq_ref[...] = jnp.zeros_like(sq_ref)

    y = jnp.dot(w_ref[...], p_ref[0], preferred_element_type=jnp.float32)   # (Cr, TM) fp32
    y_ref[0] = y.astype(y_ref.dtype)
    # Zero-padded spatial columns contribute nothing; we divide by the true count in the wrapper.
    sum_ref[0] += jnp.sum(y, axis=1, keepdims=True)
    sq_ref[0] += jnp.sum(y * y, axis=1, keepdims=True)


def _bn_lrelu_kernel(y_ref, scale_ref, shift_ref, o_ref):
    # y: (1, Cr, TM) bf16   scale/shift: (Cr, 1) fp32   o: (1, Cr, TM) fp32 (lane-dense stores)
    z = y_ref[0].astype(jnp.float32) * scale_ref[...] + shift_ref[...]
    o_ref[0] = jnp.maximum(z, LRELU_SLOPE * z)


@jax.jit
def conv_with_activation(x, weight, bias, gamma, beta):
    """x: (N, Cin, H, W) f32; weight: (Cout, Cin, KH, KW). Returns (N, Cout, OH, OW) f32."""
    del bias   # exact: a per-channel constant cancels under train-mode batch normalization
    N, Cin, H, W = x.shape
    Cout = weight.shape[0]
    OH = (H + 2 * PAD - KH) // STRIDE + 1
    OW = (W + 2 * PAD - KW) // STRIDE + 1
    OHW = OH * OW
    K = Cin * KH * KW
    Cr = _round_up(Cout, 8)            # sublane-rounded channels; no 128-padding in HBM

    budget, vmem_limit = _vmem_budget_bytes()
    tm, ohw_pad = _pick_tile(OHW, K, Cr, budget)
    n_t = ohw_pad // tm

    # ---- im2col built (K, OH*OW)-major per image, in bf16 (halves dominant HBM traffic) ----
    xb = jnp.transpose(x, (0, 2, 3, 1)).astype(jnp.bfloat16)          # NHWC
    xp = jnp.pad(xb, ((0, 0), (PAD, PAD), (PAD, PAD), (0, 0)))
    cols = []
    for kh in range(KH):
        for kw in range(KW):
            cols.append(xp[:, kh:kh + STRIDE * OH:STRIDE, kw:kw + STRIDE * OW:STRIDE, :])
    pt = jnp.stack(cols, axis=1)                                      # (N, 16, OH, OW, Cin)
    pt = jnp.transpose(pt, (0, 1, 4, 2, 3)).reshape(N, K, OHW)        # K ordered (kh, kw, ci)
    if ohw_pad != OHW:
        pt = jnp.pad(pt, ((0, 0), (0, 0), (0, ohw_pad - OHW)))

    # weights -> (Cr, K) bf16, K in the matching (kh, kw, ci) order
    w_t = jnp.transpose(weight, (0, 2, 3, 1)).reshape(Cout, K)
    if Cr != Cout:
        w_t = jnp.pad(w_t, ((0, Cr - Cout), (0, 0)))
    w_t = w_t.astype(jnp.bfloat16)

    params1 = pltpu.CompilerParams(dimension_semantics=("parallel", "arbitrary"),
                                   vmem_limit_bytes=vmem_limit)
    params2 = pltpu.CompilerParams(dimension_semantics=("parallel", "parallel"),
                                   vmem_limit_bytes=vmem_limit)

    # ---- pass 1: conv matmul (channel-major y) + per-image channel sum / sum-of-squares ----
    y, s1, s2 = pl.pallas_call(
        _conv_stats_kernel,
        out_shape=(jax.ShapeDtypeStruct((N, Cr, ohw_pad), jnp.bfloat16),
                   jax.ShapeDtypeStruct((N, Cr, 128), jnp.float32),
                   jax.ShapeDtypeStruct((N, Cr, 128), jnp.float32)),
        grid=(N, n_t),
        in_specs=[pl.BlockSpec((1, K, tm), lambda n, t: (n, 0, t)),
                  pl.BlockSpec((Cr, K), lambda n, t: (0, 0))],       # weights resident
        out_specs=(pl.BlockSpec((1, Cr, tm), lambda n, t: (n, 0, t)),
                   pl.BlockSpec((1, Cr, 128), lambda n, t: (n, 0, 0)),   # per-image accumulators
                   pl.BlockSpec((1, Cr, 128), lambda n, t: (n, 0, 0))),
        compiler_params=params1,
        cost_estimate=pl.CostEstimate(
            flops=2 * N * Cr * K * ohw_pad, transcendentals=0,
            bytes_accessed=2 * N * K * ohw_pad + 2 * Cr * K + 2 * N * Cr * ohw_pad),
    )(pt, w_t)

    # ---- tiny XLA glue: fold train-mode BN into per-channel scale/shift ----
    cnt = float(N * OHW)
    ch_sum = jnp.sum(s1[:, :, 0], axis=0)
    ch_sq = jnp.sum(s2[:, :, 0], axis=0)
    mean = ch_sum / cnt
    var = jnp.maximum(ch_sq / cnt - mean * mean, 0.0)     # biased variance (BN normalization)
    gamma_r = jnp.pad(gamma.astype(jnp.float32), (0, Cr - Cout), constant_values=1.0)
    beta_r = jnp.pad(beta.astype(jnp.float32), (0, Cr - Cout))
    inv_std = jax.lax.rsqrt(var + BN_EPS)
    scale_v = gamma_r * inv_std
    shift_v = beta_r - mean * scale_v
    scale = scale_v.reshape(Cr, 1)
    shift = shift_v.reshape(Cr, 1)

    # ---- pass 2: normalize + LeakyReLU, written channel-major (no trailing transpose) ----
    out = pl.pallas_call(
        _bn_lrelu_kernel,
        out_shape=jax.ShapeDtypeStruct((N, Cr, ohw_pad), jnp.float32),
        grid=(N, n_t),
        in_specs=[pl.BlockSpec((1, Cr, tm), lambda n, t: (n, 0, t)),
                  pl.BlockSpec((Cr, 1), lambda n, t: (0, 0)),
                  pl.BlockSpec((Cr, 1), lambda n, t: (0, 0))],
        out_specs=pl.BlockSpec((1, Cr, tm), lambda n, t: (n, 0, t)),
        compiler_params=params2,
        cost_estimate=pl.CostEstimate(
            flops=4 * N * Cr * ohw_pad, transcendentals=0,
            bytes_accessed=6 * N * Cr * ohw_pad),
    )(y, scale, shift)

    if Cr != Cout or ohw_pad != OHW:
        out = out[:, :Cout, :OHW]
    return out.reshape(N, Cout, OH, OW)


def _reference(x, weight, bias, gamma, beta):
    """Pure-JAX fp32 reference: Conv2d -> train-mode BatchNorm2d -> LeakyReLU(0.01)."""
    y = jax.lax.conv_general_dilated(
        x, weight, window_strides=(STRIDE, STRIDE), padding=((PAD, PAD), (PAD, PAD)),
        dimension_numbers=("NCHW", "OIHW", "NCHW"))
    y = y + bias[None, :, None, None]
    mean = jnp.mean(y, axis=(0, 2, 3), keepdims=True)
    var = jnp.mean((y - mean) ** 2, axis=(0, 2, 3), keepdims=True)
    z = (y - mean) * jax.lax.rsqrt(var + BN_EPS)
    z = gamma[None, :, None, None] * z + beta[None, :, None, None]
    return jnp.where(z >= 0, z, LRELU_SLOPE * z)


if __name__ == "__main__":
    key = jax.random.PRNGKey(0)
    k_x, k_w, k_b = jax.random.split(key, 3)

    N, Cin, H, W = 2, 4, 16, 16
    Cout = 8

    x = jax.random.normal(k_x, (N, Cin, H, W), dtype=jnp.float32)
    fan_in = Cin * KH * KW
    bound = float(fan_in) ** -0.5
    weight = jax.random.uniform(k_w, (Cout, Cin, KH, KW), minval=-bound, maxval=bound,
                                dtype=jnp.float32)
    bias = jax.random.uniform(k_b, (Cout,), minval=-bound, maxval=bound, dtype=jnp.float32)
    gamma = jnp.ones((Cout,), dtype=jnp.float32)   # BatchNorm2d default affine weight
    beta = jnp.zeros((Cout,), dtype=jnp.float32)   # BatchNorm2d default affine bias

    out = conv_with_activation(x, weight, bias, gamma, beta)
    jax.block_until_ready(out)
    assert out.shape == (N, Cout, 8, 8), out.shape

    ref = _reference(x, weight, bias, gamma, beta)
    err = float(jnp.max(jnp.abs(out - ref)))
    assert err < 0.15, f"max abs error vs reference: {err}"   # bf16 operands -> loose tolerance

    print("KERNEL_OK")
</pallas_src>

<mosaic_0001>
module attributes {stable_mosaic.version = 11 : i64} {
  func.func @_conv_stats_kernel(%arg0: i32, %arg1: i32, %arg2: memref<1x64x64xbf16, #tpu.memory_space<vmem>>, %arg3: memref<8x64xbf16, #tpu.memory_space<vmem>>, %arg4: memref<1x8x64xbf16, #tpu.memory_space<vmem>>, %arg5: memref<1x8x128xf32, #tpu.memory_space<vmem>>, %arg6: memref<1x8x128xf32, #tpu.memory_space<vmem>>) attributes {dimension_semantics = [#tpu.dimension_semantics<parallel>, #tpu.dimension_semantics<arbitrary>], iteration_bounds = array<i64: 2, 1>, scalar_prefetch = 0 : i64, scratch_operands = 0 : i64, tpu.core_type = #tpu.core_type<tc>, window_params = [{transform_indices = @transform_0, window_bounds = array<i64: 1, 64, 64>}, {pipeline_mode = #tpu.pipeline_mode<synchronous>, transform_indices = @transform_1, window_bounds = array<i64: 8, 64>}, {transform_indices = @transform_2, window_bounds = array<i64: 1, 8, 64>}, {transform_indices = @transform_3, window_bounds = array<i64: 1, 8, 128>}, {transform_indices = @transform_4, window_bounds = array<i64: 1, 8, 128>}]} {
    %c0_i32 = arith.constant 0 : i32
    %0 = arith.cmpi eq, %arg1, %c0_i32 : i32
    %1 = arith.extui %0 : i1 to i32
    %c0_i32_0 = arith.constant 0 : i32
    %2 = arith.cmpi ne, %1, %c0_i32_0 : i32
    scf.if %2 {
      %cst_22 = arith.constant 0.000000e+00 : f32
      %30 = vector.broadcast %cst_22 : f32 to vector<1x8x128xf32>
      %c0_23 = arith.constant 0 : index
      %c0_24 = arith.constant 0 : index
      %c0_25 = arith.constant 0 : index
      %31 = vector.load %arg5[%c0_23, %c0_24, %c0_25] : memref<1x8x128xf32, #tpu.memory_space<vmem>>, vector<1x8x128xf32>
      tpu.vector_store %arg5[%c0_23, %c0_24, %c0_25], %30 {strides = array<i32>} : memref<1x8x128xf32, #tpu.memory_space<vmem>>, vector<1x8x128xf32>,
      %cst_26 = arith.constant 0.000000e+00 : f32
      %32 = vector.broadcast %cst_26 : f32 to vector<1x8x128xf32>
      %c0_27 = arith.constant 0 : index
      %c0_28 = arith.constant 0 : index
      %c0_29 = arith.constant 0 : index
      %33 = vector.load %arg6[%c0_27, %c0_28, %c0_29] : memref<1x8x128xf32, #tpu.memory_space<vmem>>, vector<1x8x128xf32>
      tpu.vector_store %arg6[%c0_27, %c0_28, %c0_29], %32 {strides = array<i32>} : memref<1x8x128xf32, #tpu.memory_space<vmem>>, vector<1x8x128xf32>,
    } else {
    }
    %c0 = arith.constant 0 : index
    %c0_1 = arith.constant 0 : index
    %3 = vector.load %arg3[%c0, %c0_1] : memref<8x64xbf16, #tpu.memory_space<vmem>>, vector<8x64xbf16>
    %c0_2 = arith.constant 0 : index
    %c0_3 = arith.constant 0 : index
    %c0_4 = arith.constant 0 : index
    %4 = vector.load %arg2[%c0_2, %c0_3, %c0_4] : memref<1x64x64xbf16, #tpu.memory_space<vmem>>, vector<1x64x64xbf16>
    %5 = vector.shape_cast %4 : vector<1x64x64xbf16> to vector<64x64xbf16>
    %cst = arith.constant dense<0.000000e+00> : vector<8x64xf32>
    %6 = tpu.matmul %3, %5, %cst {dimension_numbers = #tpu.dot_dimension_numbers<[1], [0], [0], [1], [0, 0, 1, 1], [], []>} : vector<8x64xbf16>, vector<64x64xbf16>, vector<8x64xf32> -> vector<8x64xf32>
    %7 = arith.truncf %6 : vector<8x64xf32> to vector<8x64xbf16>
    %c0_5 = arith.constant 0 : index
    %c0_6 = arith.constant 0 : index
    %c0_7 = arith.constant 0 : index
    %8 = vector.load %arg4[%c0_5, %c0_6, %c0_7] : memref<1x8x64xbf16, #tpu.memory_space<vmem>>, vector<1x8x64xbf16>
    %9 = vector.shape_cast %8 : vector<1x8x64xbf16> to vector<8x64xbf16>
    %10 = vector.shape_cast %7 : vector<8x64xbf16> to vector<1x8x64xbf16>
    tpu.vector_store %arg4[%c0_5, %c0_6, %c0_7], %10 {strides = array<i32>} : memref<1x8x64xbf16, #tpu.memory_space<vmem>>, vector<1x8x64xbf16>,
    %c0_8 = arith.constant 0 : index
    %c0_9 = arith.constant 0 : index
    %c0_10 = arith.constant 0 : index
    %11 = vector.load %arg5[%c0_8, %c0_9, %c0_10] : memref<1x8x128xf32, #tpu.memory_space<vmem>>, vector<1x8x128xf32>
    %12 = vector.shape_cast %11 : vector<1x8x128xf32> to vector<8x128xf32>
    %cst_11 = arith.constant dense<0.000000e+00> : vector<8xf32>
    %13 = vector.multi_reduction <add>, %6, %cst_11 [1] : vector<8x64xf32> to vector<8xf32>
    %14 = vector.shape_cast %13 : vector<8xf32> to vector<8x1xf32>
    %15 = vector.broadcast %14 : vector<8x1xf32> to vector<8x128xf32>
    %16 = arith.addf %12, %15 : vector<8x128xf32>
    %c0_12 = arith.constant 0 : index
    %c0_13 = arith.constant 0 : index
    %c0_14 = arith.constant 0 : index
    %17 = vector.load %arg5[%c0_12, %c0_13, %c0_14] : memref<1x8x128xf32, #tpu.memory_space<vmem>>, vector<1x8x128xf32>
    %18 = vector.shape_cast %17 : vector<1x8x128xf32> to vector<8x128xf32>
    %19 = vector.shape_cast %16 : vector<8x128xf32> to vector<1x8x128xf32>
    tpu.vector_store %arg5[%c0_12, %c0_13, %c0_14], %19 {strides = array<i32>} : memref<1x8x128xf32, #tpu.memory_space<vmem>>, vector<1x8x128xf32>,
    %c0_15 = arith.constant 0 : index
    %c0_16 = arith.constant 0 : index
    %c0_17 = arith.constant 0 : index
    %20 = vector.load %arg6[%c0_15, %c0_16, %c0_17] : memref<1x8x128xf32, #tpu.memory_space<vmem>>, vector<1x8x128xf32>
    %21 = vector.shape_cast %20 : vector<1x8x128xf32> to vector<8x128xf32>
    %22 = arith.mulf %6, %6 : vector<8x64xf32>
    %cst_18 = arith.constant dense<0.000000e+00> : vector<8xf32>
    %23 = vector.multi_reduction <add>, %22, %cst_18 [1] : vector<8x64xf32> to vector<8xf32>
    %24 = vector.shape_cast %23 : vector<8xf32> to vector<8x1xf32>
    %25 = vector.broadcast %24 : vector<8x1xf32> to vector<8x128xf32>
    %26 = arith.addf %21, %25 : vector<8x128xf32>
    %c0_19 = arith.constant 0 : index
    %c0_20 = arith.constant 0 : index
    %c0_21 = arith.constant 0 : index
    %27 = vector.load %arg6[%c0_19, %c0_20, %c0_21] : memref<1x8x128xf32, #tpu.memory_space<vmem>>, vector<1x8x128xf32>
    %28 = vector.shape_cast %27 : vector<1x8x128xf32> to vector<8x128xf32>
    %29 = vector.shape_cast %26 : vector<8x128xf32> to vector<1x8x128xf32>
    tpu.vector_store %arg6[%c0_19, %c0_20, %c0_21], %29 {strides = array<i32>} : memref<1x8x128xf32, #tpu.memory_space<vmem>>, vector<1x8x128xf32>,
    return
  }
  func.func @transform_0(%arg0: i32, %arg1: i32) -> (i32, i32, i32) {
    %c0_i32 = arith.constant 0 : i32
    %c0_i32_0 = arith.constant 0 : i32
    return %arg0, %c0_i32, %arg1 : i32, i32, i32
  }
  func.func @transform_1(%arg0: i32, %arg1: i32) -> (i32, i32) {
    %c0_i32 = arith.constant 0 : i32
    %c0_i32_0 = arith.constant 0 : i32
    %c0_i32_1 = arith.constant 0 : i32
    return %c0_i32, %c0_i32_0 : i32, i32
  }
  func.func @transform_2(%arg0: i32, %arg1: i32) -> (i32, i32, i32) {
    %c0_i32 = arith.constant 0 : i32
    %c0_i32_0 = arith.constant 0 : i32
    return %arg0, %c0_i32, %arg1 : i32, i32, i32
  }
  func.func @transform_3(%arg0: i32, %arg1: i32) -> (i32, i32, i32) {
    %c0_i32 = arith.constant 0 : i32
    %c0_i32_0 = arith.constant 0 : i32
    %c0_i32_1 = arith.constant 0 : i32
    return %arg0, %c0_i32, %c0_i32_0 : i32, i32, i32
  }
  func.func @transform_4(%arg0: i32, %arg1: i32) -> (i32, i32, i32) {
    %c0_i32 = arith.constant 0 : i32
    %c0_i32_0 = arith.constant 0 : i32
    %c0_i32_1 = arith.constant 0 : i32
    return %arg0, %c0_i32, %c0_i32_0 : i32, i32, i32
  }
}

module attributes {stable_mosaic.version = 11 : i64} {
  func.func @_bn_lrelu_kernel(%arg0: i32, %arg1: i32, %arg2: memref<1x8x64xbf16, #tpu.memory_space<vmem>>, %arg3: memref<8x1xf32, #tpu.memory_space<vmem>>, %arg4: memref<8x1xf32, #tpu.memory_space<vmem>>, %arg5: memref<1x8x64xf32, #tpu.memory_space<vmem>>) attributes {dimension_semantics = [#tpu.dimension_semantics<parallel>, #tpu.dimension_semantics<parallel>], iteration_bounds = array<i64: 2, 1>, scalar_prefetch = 0 : i64, scratch_operands = 0 : i64, tpu.core_type = #tpu.core_type<tc>, window_params = [{transform_indices = @transform_0, window_bounds = array<i64: 1, 8, 64>}, {pipeline_mode = #tpu.pipeline_mode<synchronous>, transform_indices = @transform_1, window_bounds = array<i64: 8, 1>}, {pipeline_mode = #tpu.pipeline_mode<synchronous>, transform_indices = @transform_2, window_bounds = array<i64: 8, 1>}, {transform_indices = @transform_3, window_bounds = array<i64: 1, 8, 64>}]} {
    %c0 = arith.constant 0 : index
    %c0_0 = arith.constant 0 : index
    %c0_1 = arith.constant 0 : index
    %0 = vector.load %arg2[%c0, %c0_0, %c0_1] : memref<1x8x64xbf16, #tpu.memory_space<vmem>>, vector<1x8x64xbf16>
    %1 = vector.shape_cast %0 : vector<1x8x64xbf16> to vector<8x64xbf16>
    %2 = arith.extf %1 : vector<8x64xbf16> to vector<8x64xf32>
    %c0_2 = arith.constant 0 : index
    %c0_3 = arith.constant 0 : index
    %3 = vector.load %arg3[%c0_2, %c0_3] : memref<8x1xf32, #tpu.memory_space<vmem>>, vector<8x1xf32>
    %4 = vector.broadcast %3 : vector<8x1xf32> to vector<8x64xf32>
    %5 = arith.mulf %2, %4 : vector<8x64xf32>
    %c0_4 = arith.constant 0 : index
    %c0_5 = arith.constant 0 : index
    %6 = vector.load %arg4[%c0_4, %c0_5] : memref<8x1xf32, #tpu.memory_space<vmem>>, vector<8x1xf32>
    %7 = vector.broadcast %6 : vector<8x1xf32> to vector<8x64xf32>
    %8 = arith.addf %5, %7 : vector<8x64xf32>
    %cst = arith.constant 0.00999999977 : f32
    %9 = vector.broadcast %cst : f32 to vector<8x64xf32>
    %10 = arith.mulf %9, %8 : vector<8x64xf32>
    %11 = arith.maximumf %8, %10 : vector<8x64xf32>
    %c0_6 = arith.constant 0 : index
    %c0_7 = arith.constant 0 : index
    %c0_8 = arith.constant 0 : index
    %12 = vector.load %arg5[%c0_6, %c0_7, %c0_8] : memref<1x8x64xf32, #tpu.memory_space<vmem>>, vector<1x8x64xf32>
    %13 = vector.shape_cast %12 : vector<1x8x64xf32> to vector<8x64xf32>
    %14 = vector.shape_cast %11 : vector<8x64xf32> to vector<1x8x64xf32>
    tpu.vector_store %arg5[%c0_6, %c0_7, %c0_8], %14 {strides = array<i32>} : memref<1x8x64xf32, #tpu.memory_space<vmem>>, vector<1x8x64xf32>,
    return
  }
  func.func @transform_0(%arg0: i32, %arg1: i32) -> (i32, i32, i32) {
    %c0_i32 = arith.constant 0 : i32
    %c0_i32_0 = arith.constant 0 : i32
    return %arg0, %c0_i32, %arg1 : i32, i32, i32
  }
  func.func @transform_1(%arg0: i32, %arg1: i32) -> (i32, i32) {
    %c0_i32 = arith.constant 0 : i32
    %c0_i32_0 = arith.constant 0 : i32
    %c0_i32_1 = arith.constant 0 : i32
    return %c0_i32, %c0_i32_0 : i32, i32
  }
  func.func @transform_2(%arg0: i32, %arg1: i32) -> (i32, i32) {
    %c0_i32 = arith.constant 0 : i32
    %c0_i32_0 = arith.constant 0 : i32
    %c0_i32_1 = arith.constant 0 : i32
    return %c0_i32, %c0_i32_0 : i32, i32
  }
  func.func @transform_3(%arg0: i32, %arg1: i32) -> (i32, i32, i32) {
    %c0_i32 = arith.constant 0 : i32
    %c0_i32_0 = arith.constant 0 : i32
    return %arg0, %c0_i32, %arg1 : i32, i32, i32
  }
}

</mosaic_0001>

<bundles_post_ra>
// kernel: conv_with_activation.3
= control target key start
LH: loop header
LB: loop body
LE: loop exit
PB: predicated region body
PF: predicated region fallthrough
CT: control target
= control target key end

     0   :  { %s371_s12 = smov 0   ;;  %s373_s13 = smov 0   ;;  %s407_s0 = inlined_call_operand.vmem [shape: bf16[2,8,64], index: 0, kind: input, shape index: {}]   ;;  %s408_s1 = inlined_call_operand.vmem [shape: f32[8,1], index: 1, kind: input, shape index: {}]   ;;  %s409_s2 = inlined_call_operand.vmem [shape: f32[8,1], index: 2, kind: input, shape index: {}]   ;;  %s410_s3 = inlined_call_operand.vmem [shape: f32[2,8,64], index: 3, kind: output, shape index: {}]  }
   0x1   :  { %s375_s14 = smov 0  }
   0x2 LB: > { %s25_s15 = sadd.s32 1, %s344_s13  ;;  %p295_p0 = scmp.ge.s32.totalorder %s348_s14, 1  ;;  %s348_s14 = sphi %s375_s14, %s13_s14   ;;  %s344_s13 = sphi %s373_s13, %s412_s13   ;;  %s340_s12 = sphi %s371_s12, %s411_s12  }
   0x3   : > { %p27_p1 = scmp.ge.s32.totalorder %s25_s15, 2  ;;  %p155_p2 = scmp.lt.s32.totalorder %s348_s14, 3 }
   0x5   : > { %s414_s15 = smov (%p27_p1, %s25_s15), 0  ;;  %p156_p3 = pnand %p295_p0, %p155_p2 }
   0x6   : > { %p183_p4 = scmp.lt.s32.totalorder (!%p156_p3), %s340_s12, 1 }
   0x7   : > { %159 = sbr.rel (%p156_p3) target bundleno = 149 (0x95), region = 32 }
   0xc   : > { %v199_v0 = vld [vmem:[%s408_s1] sm:$0xff]  ;;  %v350_v1 = vmov 0   ;;  %s416_s12 = smov (!%p183_p4, %s340_s12), 1  ;;  %vm215_vm0 = vcmask 523264  }
   0xd   : > { %325 = vset.pattern.permute.xlu0 %v350_v1  ;;  %v206_v2 = vld [vmem:[%s409_s2] sm:$0xff]  ;;  %s296_s20 = sshll.u32 %s416_s12, 2  ;;  %s297_s24 = sshll.u32 %s416_s12, 3 }
   0xe   : > { %202 = vperm.xlu0 %325, %v199_v0   ;;  %s189_s23 = scalar_lea.vmem %s407_s0, %s296_s20  ;;  %s196_s27 = scalar_lea.vmem %s410_s3, %s297_s24 }
   0xf   : > { %v197_v3 = vld [vmem:[%s189_s23] sm:$0xf] }
  0x10   : > { %v198_v4 = vunpack.c.l.bf16 %v197_v3 }
  0x12   : > { %209 = vperm.xlu0 %325, %v206_v2  }
  0x89   : > { %v203_v5 = vpop.permute.xlu0 %202 }
  0x8a   : > { %v205_v6 = vmul.f32 %v203_v5, %v198_v4 }
  0x8d   : > { %v210_v7 = vpop.permute.xlu0 %209 }
  0x8e   : > { %v212_v8 = vadd.f32 %v210_v7, %v205_v6 }
  0x90   : > { %v213_v9 = vmul.f32 0.01, %v212_v8 }
  0x92   : > { %v214_v10 = vmax.f32 %v212_v8, %v213_v9 }
  0x94   : > { %216 = vst.msk [vmem:[%s196_s27] sm:$0xff] %vm215_vm0, %v214_v10 }
  0x95 PF: > { %s13_s14 = sadd.s32 1, %s348_s14   ;;  %s411_s12 = smov %s344_s13 }
  0x96   : > { %p10_p5 = scmp.ge.s32.totalorder %s13_s14, 4   ;;  %s412_s13 = smov %s414_s15 }
  0x98   :  { %12 = sbr.rel (!%p10_p5) target bundleno = 2 (0x2), region = 62 }

// kernel: conv_with_activation.2
= control target key start
LH: loop header
LB: loop body
LE: loop exit
PB: predicated region body
PF: predicated region fallthrough
CT: control target
= control target key end

     0   :  { %s603_s15 = smov 0   ;;  %s605_s16 = smov 0   ;;  %s650_s0 = inlined_call_operand.vmem [shape: bf16[2,64,64], index: 0, kind: input, shape index: {}]   ;;  %s651_s1 = inlined_call_operand.vmem [shape: bf16[8,64], index: 1, kind: input, shape index: {}]   ;;  %s652_s2 = inlined_call_operand.vmem [shape: bf16[2,8,64], index: 2, kind: output, shape index: {0}]   ;;  %s653_s3 = inlined_call_operand.vmem [shape: f32[2,8,128], index: 3, kind: output, shape index: {1}]   ;;  %s654_s4 = inlined_call_operand.vmem [shape: f32[2,8,128], index: 4, kind: output, shape index: {2}]  }
   0x1   :  { %s607_s17 = smov 0  }
   0x2 LB: > { %s27_s18 = sadd.s32 1, %s570_s16  ;;  %p491_p0 = scmp.ge.s32.totalorder %s574_s17, 1  ;;  %s574_s17 = sphi %s607_s17, %s15_s17   ;;  %s570_s16 = sphi %s605_s16, %s656_s16   ;;  %s566_s15 = sphi %s603_s15, %s655_s15  }
   0x3   : > { %p29_p1 = scmp.ge.s32.totalorder %s27_s18, 2  ;;  %p186_p2 = scmp.lt.s32.totalorder %s574_s17, 3 }
   0x5   : > { %s658_s18 = smov (%p29_p1, %s27_s18), 0  ;;  %p187_p3 = pnand %p491_p0, %p186_p2 }
   0x6   : > { %p225_p4 = scmp.lt.s32.totalorder (!%p187_p3), %s566_s15, 1 }
   0x7   : > { %190 = sbr.rel (%p187_p3) target bundleno = 368 (0x170), region = 28 }
   0xc   : > { %v576_v0 = vmov 0.0   ;;  %vm577_vm0 = vmmov 0   ;;  %s660_s15 = smov (!%p225_p4, %s566_s15), 1  ;;  %v255_v5 = vld [vmem:[%s651_s1] sm:$0xf]  ;;  %vm288_vm1 = vcmask 523264  }
   0xd   : > { %510 = vmatprep.subr.bf16.mxu0 %v576_v0  ;;  %518 = vmatprep.mubr.msk.bf16.mxu0 %vm577_vm0, %v576_v0  ;;  %s504_s19 = sshll.u32 %s660_s15, 5  ;;  %s494_s25 = sshll.u32 %s660_s15, 2  ;;  %vm333_vm2 = vcmask 519168  }
   0xe   : > { %s232_s22 = scalar_lea.vmem %s650_s0, %s504_s19  ;;  %s239_s28 = scalar_lea.vmem %s652_s2, %s494_s25 }
   0xf   : > { %v548_v1 = vld [vmem:[%s232_s22 + $0x18] sm:$0xff]   ;;  %v549_v2 = vld [vmem:[%s232_s22 + $0x10] sm:$0xff]   ;;  %v550_v3 = vld [vmem:[%s232_s22 + $0x8] sm:$0xff]   ;;  %s495_s29 = sshll.u32 %s660_s15, 3 }
  0x10   : > { %511 = vmatpush3.bf16.msra.mxu0 %v548_v1  ;;  %v551_v4 = vld [vmem:[%s232_s22] sm:$0xff]   ;;  %s243_s6 = scalar_lea.vmem %s653_s3, %s495_s29  ;;  %s247_s9 = scalar_lea.vmem %s654_s4, %s495_s29 }
  0x11   : > { %512 = vmatprep.subr.bf16.mxu0 %v576_v0 }
  0x14   : > { %513 = vmatpush3.bf16.msra.mxu0 %v549_v2 }
  0x15   : > { %514 = vmatprep.subr.bf16.mxu0 %v576_v0 }
  0x18   : > { %515 = vmatpush3.bf16.msra.mxu0 %v550_v3 }
  0x19   : > { %516 = vmatprep.subr.bf16.mxu0 %v576_v0 }
  0x1c   : > { %517 = vmatpush3.bf16.msra.mxu0 %v551_v4 }
  0x1f   : > { %519 = vmatmul.mubr.msk.bf16.vlgmr.msra.gmra.mxu0 %vm288_vm1, %v255_v5 }
  0xdf   : > { %v326_v6 = vpop.f32.mrf.mxu0 }
  0xe0   : > { %v332_v7 = vpack.c.bf16 %v326_v6, %v326_v6  ;;  %v336_v8 = vsel %vm288_vm1, %v326_v6, 0.0  ;;  %v342_v9 = vmul.f32 %v326_v6, %v326_v6 }
  0xe1   : > { %337 = vadd.xlane.f32.xlu0 %v336_v8  ;;  %v520_v10 = vpop.f32.mrf.mxu0 }
  0xe2   : > { %334 = vst.msk [vmem:[%s239_s28] sm:$0xf] %vm333_vm2, %v332_v7  ;;  %v343_v12 = vsel %vm288_vm1, %v342_v9, 0.0 }
  0xe3   : > { %v329_v11 = vpop.f32.mrf.mxu0 }
  0xe5   : > { %344 = vadd.xlane.f32.xlu0 %v343_v12  ;;  %v521_v13 = vpop.f32.mrf.mxu0 }
 0x16a   : > { %v338_v14 = vpop.xlane.xlu0 %337 }
 0x16b   : > { %340 = vst [vmem:[%s243_s6] sm:$0xff] %v338_v14 }
 0x16e   : > { %v345_v15 = vpop.xlane.xlu0 %344 }
 0x16f   : > { %347 = vst [vmem:[%s247_s9] sm:$0xff] %v345_v15 }
 0x170 PF: > { %s15_s17 = sadd.s32 1, %s574_s17   ;;  %s655_s15 = smov %s570_s16 }
 0x171   : > { %p12_p5 = scmp.ge.s32.totalorder %s15_s17, 4   ;;  %s656_s16 = smov %s658_s18 }
 0x173   :  { %14 = sbr.rel (!%p12_p5) target bundleno = 2 (0x2), region = 86 }

</bundles_post_ra>
